<compile_context>
chip_gen: v6e
topology: v6e:2x2x1
jax: 0.10.0
libtpu: 0.0.40
codegen_flags: <defaults>
</compile_context>

<pallas_src>
import jax
import jax.numpy as jnp
from jax.experimental import pallas as pl
from jax.experimental.pallas import tpu as pltpu


def _round_up(x, m):
    return ((x + m - 1) // m) * m


def _choose_tiling(m, *, max_tm=512, align=16, min_steps=2):
    """Pick a row-tile size with <1 tile of padding and (when M allows) >=2
    grid steps so the 'parallel' axis can be sharded across v7x's 2 TCs."""
    m_al = _round_up(max(m, 1), align)
    steps = max(1, -(-m_al // max_tm))
    if m_al >= min_steps * align:
        steps = max(steps, min_steps)
    tm = _round_up(-(-m_al // steps), align)
    m_pad = _round_up(m_al, tm)
    return tm, m_pad


# ---------------------------------------------------------------------------
# Pallas kernel: lane-dense (M, K) @ (K, N) + bias row
# ---------------------------------------------------------------------------
def _matmul_bias_kernel(x_ref, w_ref, b_ref, o_ref):
    acc = jnp.dot(x_ref[...], w_ref[...], preferred_element_type=jnp.float32)
    o_ref[...] = (acc + b_ref[...]).astype(o_ref.dtype)


def fused_matmul_bias(x2, w, bias_row, *, out_dtype=None,
                      compute_dtype=jnp.bfloat16, max_tm=512):
    """(M, K) @ (K, N) + bias on the MXU with a lane-dense (128-padded) output.

    K is left un-padded (kernel is memory-bound; padding K only inflates LHS
    bytes). Callers stack logical weights along N so the 128-pad is small.
    """
    M, K = x2.shape
    Kw, N = w.shape
    assert K == Kw, "contraction dims must match"
    assert bias_row.shape == (N,)
    if out_dtype is None:
        out_dtype = x2.dtype
    if compute_dtype is None:
        compute_dtype = x2.dtype

    xc = x2.astype(compute_dtype)
    wc = w.astype(compute_dtype)
    bias_f32 = bias_row.astype(jnp.float32)

    n_pad = _round_up(N, 128)
    if n_pad != N:
        wc = jnp.pad(wc, ((0, 0), (0, n_pad - N)))
        bias_f32 = jnp.pad(bias_f32, (0, n_pad - N))
    bias2 = bias_f32.reshape(1, n_pad)

    tm, m_pad = _choose_tiling(M, max_tm=max_tm, align=16)
    if m_pad != M:
        xc = jnp.pad(xc, ((0, m_pad - M), (0, 0)))

    cbytes = jnp.dtype(compute_dtype).itemsize
    obytes = jnp.dtype(out_dtype).itemsize

    out = pl.pallas_call(
        _matmul_bias_kernel,
        out_shape=jax.ShapeDtypeStruct((m_pad, n_pad), out_dtype),
        grid_spec=pltpu.PrefetchScalarGridSpec(
            num_scalar_prefetch=0,
            grid=(m_pad // tm,),
            in_specs=[
                pl.BlockSpec((tm, K), lambda i: (i, 0)),      # activation rows
                pl.BlockSpec((K, n_pad), lambda i: (0, 0)),   # fused weight
                pl.BlockSpec((1, n_pad), lambda i: (0, 0)),   # bias row
            ],
            out_specs=pl.BlockSpec((tm, n_pad), lambda i: (i, 0)),
        ),
        compiler_params=pltpu.CompilerParams(
            dimension_semantics=("parallel",),   # shard row tiles across TCs
        ),
        cost_estimate=pl.CostEstimate(
            flops=2 * m_pad * K * n_pad,
            transcendentals=0,
            bytes_accessed=(m_pad * K + K * n_pad) * cbytes
            + n_pad * 4 + m_pad * n_pad * obytes,
        ),
    )(xc, wc, bias2)
    return out[:M, :N]


# ---------------------------------------------------------------------------
# Fused-weight construction (tiny V x V work, plain XLA)
# ---------------------------------------------------------------------------
def _support_powers(adj, eps, order, dtype):
    """[L, L^2, ..., L^order, H, H^2, ..., H^order] with L/H = eps*I +/- adj."""
    v = adj.shape[0]
    eye = jnp.eye(v, dtype=dtype)
    adj = adj.astype(dtype)
    mats = []
    for a in (eps * eye + adj, eps * eye - adj):
        p = a
        mats.append(p)
        for _ in range(2, order + 1):
            p = p @ a          # chained nconv == right-multiplied matrix power
            mats.append(p)
    return jnp.stack(mats, axis=0)                      # (2*order, V, V)


def build_fused_weight(adj, mlp_w, *, eps, order):
    """K[(c,v),(o,w)] = sum_k mlp_w[o, k*C+c] * S_k[v, w]  -> (C*V, O*V)."""
    o_dim, c_in = mlp_w.shape
    k = 2 * order
    c = c_in // k
    v = adj.shape[0]
    supports = _support_powers(adj, eps, order, mlp_w.dtype)    # (k, V, V)
    wm = mlp_w.reshape(o_dim, k, c)                             # (O, k, C)
    kmat = jnp.einsum("okc,kvw->cvow", wm, supports)            # (C, V, O, V)
    return kmat.reshape(c * v, o_dim * v)


# ---------------------------------------------------------------------------
# FAGCN forward (eval mode) on the fused kernel
# ---------------------------------------------------------------------------
def fagcn_forward(x, adj, mlp_w, mlp_b, *, eps, order=2,
                  compute_dtype=jnp.bfloat16):
    """x: (N, C, V, L); adj: (V, V) -> (N, O, V, L)."""
    n, c, v, l = x.shape
    o = mlp_w.shape[0]
    kw = build_fused_weight(adj, mlp_w, eps=eps, order=order)
    x2 = jnp.transpose(x, (0, 3, 1, 2)).reshape(n * l, c * v)
    y2 = fused_matmul_bias(x2, kw, jnp.repeat(mlp_b, v),
                           out_dtype=x.dtype, compute_dtype=compute_dtype)
    # (N*L, O*V) -> (N, O, V, L)
    # F.dropout is identity in eval mode.
    # TODO(synk): training-mode dropout (pltpu.prng_*) not implemented.
    return y2.reshape(n, l, o, v).transpose(0, 2, 3, 1)


# ---------------------------------------------------------------------------
# Intergate forward — both branches share ONE activation read / ONE matmul
# ---------------------------------------------------------------------------
def intergate_forward(transform_data, variant_pattern, invariant_pattern,
                      intervene, mlp_w, mlp_b, *, eps, order=2,
                      compute_dtype=jnp.bfloat16):
    """transform_data: (b, V, T, emb); patterns: (T, V, V)."""
    b, v, t, c = transform_data.shape
    o = mlp_w.shape[0]
    t_len = invariant_pattern.shape[0]
    inv_mean = jnp.sum(invariant_pattern, axis=0) / t_len

    # rows = (batch, time), features = (channel, node): one entry transpose.
    x2 = jnp.transpose(transform_data, (0, 2, 3, 1)).reshape(b * t, c * v)

    if intervene:
        adjs = []
        for ind in range(t_len):
            adjs.append(invariant_pattern[ind] + variant_pattern[ind])
            adjs.append(invariant_pattern[ind])
        adjs.append(inv_mean)
    else:
        adjs = [inv_mean]
    n_adj = len(adjs)

    # Stack every adjacency's fused weight along the MXU N/lane dimension.
    kws = [build_fused_weight(a, mlp_w, eps=eps, order=order) for a in adjs]
    kw = jnp.concatenate(kws, axis=1)                     # (C*V, n_adj*O*V)
    bias_row = jnp.tile(jnp.repeat(mlp_b, v), n_adj)      # (n_adj*O*V,)

    y2 = fused_matmul_bias(x2, kw, bias_row,
                           out_dtype=transform_data.dtype,
                           compute_dtype=compute_dtype)   # (b*T, n_adj*O*V)

    # (b*T, A*O*V) -> (A, b, V, T, O): one exit transpose to the final layout.
    y = y2.reshape(b, t, n_adj, o, v).transpose(2, 0, 4, 1, 3)
    if intervene:
        return [y[i] for i in range(n_adj)]
    return y[0]


# ---------------------------------------------------------------------------
# Pure-JAX references (correctness checks only)
# ---------------------------------------------------------------------------
def _nconv_ref(x, A):
    return jnp.einsum("ncvl,vw->ncwl", x, A)


def _fagcn_ref(x, adj, mlp_w, mlp_b, eps, order=2):
    v = adj.shape[0]
    eye = jnp.eye(v, dtype=x.dtype)
    outs = []
    for a in (eps * eye + adj, eps * eye - adj):
        x1 = _nconv_ref(x, a)
        outs.append(x1)
        for _ in range(2, order + 1):
            x1 = _nconv_ref(x1, a)
            outs.append(x1)
    h = jnp.concatenate(outs, axis=1)
    return jnp.einsum("ncvl,oc->novl", h, mlp_w) + mlp_b[None, :, None, None]


def _intergate_ref(transform_data, variant_pattern, invariant_pattern,
                   intervene, mlp_w, mlp_b, eps, order=2):
    x = jnp.transpose(transform_data, (0, 3, 1, 2))
    t = invariant_pattern.shape[0]
    inv_rel = jnp.sum(invariant_pattern, axis=0) / t
    agg = lambda a: jnp.transpose(
        _fagcn_ref(x, a, mlp_w, mlp_b, eps, order), (0, 2, 3, 1))
    if intervene:
        feats = []
        for ind in range(t):
            feats.append(agg(invariant_pattern[ind] + variant_pattern[ind]))
            feats.append(agg(invariant_pattern[ind]))
        feats.append(agg(inv_rel))
        return feats
    return agg(inv_rel)


if __name__ == "__main__":
    key = jax.random.PRNGKey(0)
    k_td, k_var, k_inv, k_w, k_b, k_x, k_a = jax.random.split(key, 7)

    # Small shapes consistent with Intergate:
    #   transform_data: (batch, num_nodes, lookback, emb_dim)
    #   patterns:       (lookback, num_nodes, num_nodes)
    batch, num_nodes, lookback, emb_dim = 2, 16, 8, 4
    order, eps = 2, 0.5
    c_in, c_out = order * 2 * emb_dim, emb_dim

    transform_data = jax.random.normal(
        k_td, (batch, num_nodes, lookback, emb_dim), jnp.float32)
    variant_pattern = jax.random.uniform(
        k_var, (lookback, num_nodes, num_nodes), jnp.float32) / num_nodes
    invariant_pattern = jax.random.uniform(
        k_inv, (lookback, num_nodes, num_nodes), jnp.float32) / num_nodes
    mlp_w = jax.random.normal(k_w, (c_out, c_in), jnp.float32) * 0.1
    mlp_b = jax.random.normal(k_b, (c_out,), jnp.float32) * 0.1

    # bf16 compute / f32 accumulation -> slightly looser tolerances than f32.
    ATOL, RTOL = 2e-2, 2e-2

    # 1) fused FAGCN forward vs chained-einsum reference
    x = jax.random.normal(k_x, (batch, emb_dim, num_nodes, lookback),
                          jnp.float32)
    A = jax.random.uniform(k_a, (num_nodes, num_nodes), jnp.float32) / num_nodes
    out = jax.block_until_ready(
        fagcn_forward(x, A, mlp_w, mlp_b, eps=eps, order=order))
    ref = _fagcn_ref(x, A, mlp_w, mlp_b, eps, order)
    assert out.shape == ref.shape
    assert jnp.allclose(out, ref, atol=ATOL, rtol=RTOL), \
        "FAGCN fused kernel mismatch vs reference"

    # 2) Intergate forward, intervene=False
    res = jax.block_until_ready(intergate_forward(
        transform_data, variant_pattern, invariant_pattern, False,
        mlp_w, mlp_b, eps=eps, order=order))
    res_ref = _intergate_ref(transform_data, variant_pattern, invariant_pattern,
                             False, mlp_w, mlp_b, eps, order)
    assert res.shape == (batch, num_nodes, lookback, emb_dim)
    assert jnp.allclose(res, res_ref, atol=ATOL, rtol=RTOL), \
        "Intergate (intervene=False) mismatch"

    # 3) Intergate forward, intervene=True: 2T+1 features from a single matmul
    feats = jax.block_until_ready(intergate_forward(
        transform_data, variant_pattern, invariant_pattern, True,
        mlp_w, mlp_b, eps=eps, order=order))
    feats_ref = _intergate_ref(transform_data, variant_pattern,
                               invariant_pattern, True, mlp_w, mlp_b, eps, order)
    assert len(feats) == 2 * lookback + 1
    for f, fr in zip(feats, feats_ref):
        assert f.shape == (batch, num_nodes, lookback, emb_dim)
        assert jnp.allclose(f, fr, atol=ATOL, rtol=RTOL), \
            "Intergate (intervene=True) feature mismatch"

    print("KERNEL_OK")
</pallas_src>

<mosaic_0001>
module attributes {stable_mosaic.version = 11 : i64} {
  func.func @_matmul_bias_kernel(%arg0: i32, %arg1: memref<16x64xbf16, #tpu.memory_space<vmem>>, %arg2: memref<64x128xbf16, #tpu.memory_space<vmem>>, %arg3: memref<1x128xf32, #tpu.memory_space<vmem>>, %arg4: memref<16x128xf32, #tpu.memory_space<vmem>>) attributes {dimension_semantics = [#tpu.dimension_semantics<parallel>], iteration_bounds = array<i64: 1>, scalar_prefetch = 0 : i64, scratch_operands = 0 : i64, tpu.core_type = #tpu.core_type<tc>, window_params = [{transform_indices = @transform_0, window_bounds = array<i64: 16, 64>}, {pipeline_mode = #tpu.pipeline_mode<synchronous>, transform_indices = @transform_1, window_bounds = array<i64: 64, 128>}, {pipeline_mode = #tpu.pipeline_mode<synchronous>, transform_indices = @transform_2, window_bounds = array<i64: 1, 128>}, {transform_indices = @transform_3, window_bounds = array<i64: 16, 128>}]} {
    %c0 = arith.constant 0 : index
    %c0_0 = arith.constant 0 : index
    %0 = vector.load %arg1[%c0, %c0_0] : memref<16x64xbf16, #tpu.memory_space<vmem>>, vector<16x64xbf16>
    %c0_1 = arith.constant 0 : index
    %c0_2 = arith.constant 0 : index
    %1 = vector.load %arg2[%c0_1, %c0_2] : memref<64x128xbf16, #tpu.memory_space<vmem>>, vector<64x128xbf16>
    %cst = arith.constant dense<0.000000e+00> : vector<16x128xf32>
    %2 = tpu.matmul %0, %1, %cst {dimension_numbers = #tpu.dot_dimension_numbers<[1], [0], [0], [1], [0, 0, 1, 1], [], []>} : vector<16x64xbf16>, vector<64x128xbf16>, vector<16x128xf32> -> vector<16x128xf32>
    %c0_3 = arith.constant 0 : index
    %c0_4 = arith.constant 0 : index
    %3 = vector.load %arg3[%c0_3, %c0_4] : memref<1x128xf32, #tpu.memory_space<vmem>>, vector<1x128xf32>
    %4 = vector.broadcast %3 : vector<1x128xf32> to vector<16x128xf32>
    %5 = arith.addf %2, %4 : vector<16x128xf32>
    %c0_5 = arith.constant 0 : index
    %c0_6 = arith.constant 0 : index
    %6 = vector.load %arg4[%c0_5, %c0_6] : memref<16x128xf32, #tpu.memory_space<vmem>>, vector<16x128xf32>
    tpu.vector_store %arg4[%c0_5, %c0_6], %5 {strides = array<i32>} : memref<16x128xf32, #tpu.memory_space<vmem>>, vector<16x128xf32>,
    return
  }
  func.func @transform_0(%arg0: i32) -> (i32, i32) {
    %c0_i32 = arith.constant 0 : i32
    %c0_i32_0 = arith.constant 0 : i32
    return %arg0, %c0_i32 : i32, i32
  }
  func.func @transform_1(%arg0: i32) -> (i32, i32) {
    %c0_i32 = arith.constant 0 : i32
    %c0_i32_0 = arith.constant 0 : i32
    %c0_i32_1 = arith.constant 0 : i32
    return %c0_i32, %c0_i32_0 : i32, i32
  }
  func.func @transform_2(%arg0: i32) -> (i32, i32) {
    %c0_i32 = arith.constant 0 : i32
    %c0_i32_0 = arith.constant 0 : i32
    %c0_i32_1 = arith.constant 0 : i32
    return %c0_i32, %c0_i32_0 : i32, i32
  }
  func.func @transform_3(%arg0: i32) -> (i32, i32) {
    %c0_i32 = arith.constant 0 : i32
    %c0_i32_0 = arith.constant 0 : i32
    return %arg0, %c0_i32 : i32, i32
  }
}

</mosaic_0001>

<bundles_post_ra>
// kernel: tpu_custom_call.1
= control target key start
LH: loop header
LB: loop body
LE: loop exit
PB: predicated region body
PF: predicated region fallthrough
CT: control target
= control target key end

     0   :  { %8 = vsyncpa [#allocation3], 0  ;;  %s300_s0 = inlined_call_operand.hbm [shape: bf16[16,64], index: 0, kind: input, shape index: {}]   ;;  %s301_s1 = inlined_call_operand.hbm [shape: bf16[64,128], index: 1, kind: input, shape index: {}]   ;;  %s302_s2 = inlined_call_operand.vmem [shape: f32[1,128], index: 2, kind: input, shape index: {}]   ;;  %s303_s3 = inlined_call_operand.hbm [shape: f32[16,128], index: 3, kind: output, shape index: {}]  }
   0x1   :  { %9 = vsyncpa [#allocation6], 0 }
   0x2   :  { %10 = vsyncpa [#allocation4], 0  ;;  %s259_s12 = smov [#allocation2]  }
   0x3   :  { %s16_s13 = sshll.u32 %s259_s12, 4  ;;  %s17_s13 = int_to_ptr.vmem [resolvable:$true] %s16_s13 }
   0x4   :  { %s201_s14 = scalar_lea.vmem %s17_s13, 128  ;;  %p206_p1 = scmp.lt.s32.totalorder %s17_s13, %s17_s13 }
   0x5   :  { %p202_p0 = scmp.ne.s32.totalorder %s17_s13, %s201_s14  ;;  %p207_p2 = scmp.lt.s32.totalorder %s201_s14, %s201_s14 }
   0x7   :  { %p208_p3 = por %p207_p2, %p206_p1 }
   0x9   :  { %p209_p4 = pnand %p208_p3, %p202_p0 }
   0xb   :  { %212 = shalt.err (!%p209_p4)
}
   0xc   :  { %s260_s15 = smov 64   ;;  %s261_s16 = smov 4  }
   0xd   :  { %22 = dma.hbm_to_vmem [thread:$0]  %s300_s0, 128, %s17_s13, [#allocation3], %s260_s15, %s260_s15, %s261_s16  }
   0xe   :  { %s262_s19 = smov [#allocation5]  }
   0xf   :  { %s28_s20 = sshll.u32 %s262_s19, 4  ;;  %s29_s20 = int_to_ptr.vmem [resolvable:$true] %s28_s20 }
  0x10   :  { %s221_s21 = scalar_lea.vmem %s29_s20, 512  ;;  %p226_p6 = scmp.lt.s32.totalorder %s29_s20, %s29_s20 }
  0x11   :  { %p222_p5 = scmp.ne.s32.totalorder %s29_s20, %s221_s21  ;;  %p227_p7 = scmp.lt.s32.totalorder %s221_s21, %s221_s21 }
  0x13   :  { %p228_p8 = por %p227_p7, %p226_p6 }
  0x15   :  { %p229_p9 = pnand %p228_p8, %p222_p5 }
  0x17   :  { %232 = shalt.err (!%p229_p9)
}
  0x18   :  { %34 = dma.hbm_to_vmem [thread:$0]  %s301_s1, 512, %s29_s20, [#allocation6], %s260_s15, %s260_s15, %s261_s16  }
  0x19   :  { %253 = dma.done.wait [#allocation3], 128  }
  0x1a   :  { %254 = vsyncadd [#allocation3], 4294967168 }
  0x1b   :  { %255 = dma.done.wait [#allocation6], 512  }
  0x1c   :  { %256 = vsyncadd [#allocation6], 4294966784  ;;  %v263_v0 = vmov 0.0   ;;  %vm264_vm0 = vmmov 0   ;;  %v188_v1 = vld [vmem:[#allocation5 + $0x18] sm:$0xff]   ;;  %v189_v2 = vld [vmem:[#allocation5 + $0x10] sm:$0xff]  }
  0x1d   :  { %167 = vmatprep.subr.bf16.mxu0 %v263_v0  ;;  %175 = vmatprep.mubr.msk.bf16.mxu0 %vm264_vm0, %v263_v0  ;;  %v190_v3 = vld [vmem:[#allocation5 + $0x8] sm:$0xff]   ;;  %v191_v4 = vld [vmem:[#allocation5] sm:$0xff]   ;;  %v192_v5 = vld [vmem:[#allocation2] sm:$0xff]   ;;  %vm90_vm1 = vcmask 523264   ;;  %s265_s24 = smov [#allocation7]  }
  0x1e   :  { %168 = vmatpush3.bf16.msra.mxu0 %v188_v1  ;;  %v155_v6 = vld [vmem:[%s302_s2] ss:$0 sm:$0xff]  ;;  %s142_s25 = sshll.u32 %s265_s24, 4  ;;  %s143_s25 = int_to_ptr.vmem [resolvable:$true] %s142_s25 }
  0x1f   :  { %169 = vmatprep.subr.bf16.mxu0 %v263_v0  ;;  %s233_s26 = scalar_lea.vmem %s143_s25, 256  ;;  %p238_p11 = scmp.lt.s32.totalorder %s143_s25, %s143_s25 }
  0x20   :  { %p234_p10 = scmp.ne.s32.totalorder %s143_s25, %s233_s26  ;;  %p239_p12 = scmp.lt.s32.totalorder %s233_s26, %s233_s26 }
  0x22   :  { %170 = vmatpush3.bf16.msra.mxu0 %v189_v2  ;;  %p240_p13 = por %p239_p12, %p238_p11 }
  0x23   :  { %171 = vmatprep.subr.bf16.mxu0 %v263_v0 }
  0x24   :  { %p241_p0 = pnand %p240_p13, %p234_p10 }
  0x26   :  { %172 = vmatpush3.bf16.msra.mxu0 %v190_v3 }
  0x27   :  { %173 = vmatprep.subr.bf16.mxu0 %v263_v0 }
  0x2a   :  { %174 = vmatpush3.bf16.msra.mxu0 %v191_v4 }
  0x2d   :  { %176 = vmatmul.mubr.msk.bf16.vlgmr.msra.gmra.mxu0 %vm90_vm1, %v192_v5 }
  0xed   :  { %v128_v7 = vpop.f32.mrf.mxu0 }
  0xee   :  { %v129_v8 = vadd.f32 %v155_v6, %v128_v7 }
  0xef   :  { %v177_v9 = vpop.f32.mrf.mxu0 }
  0xf0   :  { %135 = vst [vmem:[#allocation7] sm:$0xff] %v129_v8 }
  0xf1   :  { %v131_v10 = vpop.f32.mrf.mxu0 }
  0xf2   :  { %v132_v11 = vadd.f32 %v155_v6, %v131_v10 }
  0xf3   :  { %v178_v12 = vpop.f32.mrf.mxu0 }
  0xf4   :  { %136 = vst [vmem:[#allocation7 + $0x8] sm:$0xff] %v132_v11 }
  0xf5   :  { %244 = shalt.err (!%p241_p0)
}
  0xf6   :  { %s266_s27 = smov 128   ;;  %s267_s2 = smov 8  }
  0xf7   :  { %148 = dma.vmem_to_hbm [thread:$0]  %s143_s25, 256, %s303_s3, [#allocation4], %s266_s27, %s266_s27, %s267_s2  }
  0xf8   :  { %257 = dma.done.wait [#allocation4], 256  }
  0xf9   :  { %258 = vsyncadd [#allocation4], 4294967040 }
  0xfa   :  { %152 = vsyncpa [#allocation3], 1 }
  0xfb   :  { %153 = vsyncpa [#allocation6], 1 }
  0xfc   :  { %154 = vsyncpa [#allocation4], 1 }

</bundles_post_ra>
